<compile_context>
chip_gen: v5e
topology: v5e:2x2
jax: 0.10.0
libtpu: 0.0.40
codegen_flags: <defaults>
</compile_context>

<pallas_src>
import functools

import jax
import jax.numpy as jnp
from jax.experimental import pallas as pl
from jax.experimental.pallas import tpu as pltpu


_LANE = 128
_SUBLANE = 8
# Per-row pred bytes above which the slice-gather path beats streaming
# (streaming DMA per row ~ row_bytes / HBM_BW vs ~0.35-0.6 us grid-step
# overhead per row for the gather).
_GATHER_ROW_BYTES = 1 << 20


def _round_up(x, m):
    return ((x + m - 1) // m) * m


def _vmem_capacity_bytes():
    try:
        return pltpu.get_tpu_info().vmem_capacity_bytes
    except Exception:
        return 64 * 1024 * 1024  # conservative (v7x-sized) fallback


def _choose_tiles(n, c, itemsize, budget_bytes):
    """(tile_n, tile_c) such that pipelined blocks + temporaries fit the budget.

    Everything that actually lives in VMEM is accounted for:
      pred:      2 (double-buffer) * tile_n * tile_c * itemsize
      f32 temps: ~2 * tile_n * tile_c * 4     (where/sum chain, if unfused)
      targets:   2 * tile_n * 128 * 4         ((tile_n, 1) i32 is lane-padded)
    """
    n_pad = _round_up(n, _SUBLANE)
    max_pred_block = 8 * 1024 * 1024        # diminishing DMA-amortization returns
    col_cost = 2 * itemsize + 2 * 4         # pred x2 buffers + f32 temps x~2
    row_fixed = 2 * _LANE * 4               # lane-padded target block, x2 buffers
    avail = max(budget_bytes - (1 << 20), 1 << 20)   # misc/output headroom

    if _SUBLANE * (c * col_cost + row_fixed) <= avail:
        # Full class dim in one block; size rows from the byte budget.
        tile_c = c
        rows = avail // (c * col_cost + row_fixed)
        rows = min(rows, max(1, max_pred_block // max(1, c * itemsize)))
        tile_n = max(_SUBLANE, (min(rows, n_pad) // _SUBLANE) * _SUBLANE)
        tile_n = min(tile_n, n_pad)
    else:
        # Vocab-scale C: tile the class axis too so double-buffering fits v7x.
        tile_n = min(_SUBLANE, n_pad)
        cols = (avail - tile_n * row_fixed) // (tile_n * col_cost)
        cols = min(cols, max(1, max_pred_block // (tile_n * itemsize)))
        tile_c = max(_LANE, (cols // _LANE) * _LANE)
        tile_c = min(tile_c, _round_up(c, _LANE))
    return tile_n, tile_c


# --------------------------------------------------------------------------- #
# Streaming path                                                              #
# --------------------------------------------------------------------------- #
def _nll_stream_kernel(pred_ref, tgt_ref, out_ref, *, n_true):
    i = pl.program_id(0)          # row block (parallel)
    j = pl.program_id(1)          # class block (reduction, innermost)
    pred = pred_ref[...]          # (tile_n, tile_c), native dtype
    tgt = tgt_ref[...]            # (tile_n, 1), int32
    tn, tc = pred.shape

    # Hot path: one compare + one select per element; f32 accumulation is
    # folded into the row reduction (native-dtype select, no f32 full tile).
    col = jax.lax.broadcasted_iota(jnp.int32, (tn, tc), 1) + j * tc
    picked = jnp.where(col == tgt, pred, jnp.zeros_like(pred))
    row_vals = jnp.sum(picked, axis=1, keepdims=True, dtype=jnp.float32)

    # Padded-row mask on the tiny (tile_n, 1) vector, kept as a *select* so
    # NaN/garbage from out-of-bounds rows cannot leak into the sum.
    row = jax.lax.broadcasted_iota(jnp.int32, (tn, 1), 0) + i * tn
    row_vals = jnp.where(row < n_true, row_vals, 0.0)
    partial = jnp.sum(row_vals)

    # Lane-dense (1, 8, 128) partial tile, accumulated across class blocks.
    sub = jax.lax.broadcasted_iota(jnp.int32, (1, _SUBLANE, _LANE), 1)
    lane = jax.lax.broadcasted_iota(jnp.int32, (1, _SUBLANE, _LANE), 2)
    tile = jnp.where((sub == 0) & (lane == 0), partial, 0.0)

    @pl.when(j == 0)
    def _():
        out_ref[...] = tile

    @pl.when(j > 0)
    def _():
        out_ref[...] += tile


def _loss_stream(pred, target, tile_n=None, tile_c=None):
    n, c = pred.shape
    itemsize = jnp.dtype(pred.dtype).itemsize
    cap = _vmem_capacity_bytes()
    budget = min(cap // 2, 96 * 1024 * 1024)   # 32 MiB on v7x, 64 MiB on v5e/v6e
    auto_n, auto_c = _choose_tiles(n, c, itemsize, budget)
    tile_n = auto_n if tile_n is None else tile_n
    tile_c = auto_c if tile_c is None else tile_c

    nb_r = pl.cdiv(n, tile_n)
    nb_c = pl.cdiv(c, tile_c)
    tgt2d = target.astype(jnp.int32).reshape(n, 1)

    partials = pl.pallas_call(
        functools.partial(_nll_stream_kernel, n_true=n),
        out_shape=jax.ShapeDtypeStruct((nb_r, _SUBLANE, _LANE), jnp.float32),
        grid=(nb_r, nb_c),
        in_specs=[
            pl.BlockSpec((tile_n, tile_c), lambda i, j: (i, j)),   # pred (native dtype)
            pl.BlockSpec((tile_n, 1), lambda i, j: (i, 0)),        # target indices
        ],
        out_specs=pl.BlockSpec((1, _SUBLANE, _LANE), lambda i, j: (i, 0, 0)),
        compiler_params=pltpu.CompilerParams(
            dimension_semantics=("parallel", "arbitrary"),   # megacore-shard rows
            vmem_limit_bytes=int(budget),
        ),
    )(pred, tgt2d)

    # Tiny finish: sum per-block partials (all non-[0,0] lanes are zero).
    return -jnp.sum(partials) / jnp.float32(n)


# --------------------------------------------------------------------------- #
# Gather path (vocab-scale C)                                                 #
# --------------------------------------------------------------------------- #
def _nll_gather_kernel(tgt_ref, pred_ref, out_ref):
    i = pl.program_id(0)
    t = tgt_ref[i]                                 # SMEM scalar (prefetched)
    lane_t = jax.lax.rem(t, _LANE)
    lane = jax.lax.broadcasted_iota(jnp.int32, (1, 1, _LANE), 2)
    out_ref[...] = jnp.where(lane == lane_t,
                             pred_ref[...].astype(jnp.float32), 0.0)


def _loss_gather(pred, target):
    n, c = pred.shape
    tgt = target.astype(jnp.int32).reshape(n)
    pred3 = pred.reshape(n, 1, c)

    picked = pl.pallas_call(
        _nll_gather_kernel,
        out_shape=jax.ShapeDtypeStruct((n, 1, _LANE), jnp.float32),
        grid_spec=pltpu.PrefetchScalarGridSpec(
            num_scalar_prefetch=1,
            grid=(n,),
            # DMA only the 128-lane class slice containing target[i].
            in_specs=[
                pl.BlockSpec((1, 1, _LANE),
                             lambda i, tgt_r: (i, 0, tgt_r[i] // _LANE)),
            ],
            out_specs=pl.BlockSpec((1, 1, _LANE), lambda i, tgt_r: (i, 0, 0)),
        ),
        compiler_params=pltpu.CompilerParams(
            dimension_semantics=("arbitrary",),
        ),
    )(tgt, pred3)

    return -jnp.sum(picked) / jnp.float32(n)


# --------------------------------------------------------------------------- #
# Public wrapper (== Classification_Loss.forward)                             #
# --------------------------------------------------------------------------- #
def classification_loss(pred, target, *, tile_n=None, tile_c=None, use_gather=None):
    n, c = pred.shape
    itemsize = jnp.dtype(pred.dtype).itemsize
    if use_gather is None:
        use_gather = c * itemsize >= _GATHER_ROW_BYTES
    if use_gather:
        return _loss_gather(pred, target)
    return _loss_stream(pred, target, tile_n=tile_n, tile_c=tile_c)


if __name__ == "__main__":
    key = jax.random.PRNGKey(0)
    k1, k2, k3, k4, k5, k6 = jax.random.split(key, 6)

    # --- main check: small shapes, f32 log-probs (streaming path) ------------
    N, C = 8, 32
    pred = jax.nn.log_softmax(jax.random.normal(k1, (N, C), jnp.float32), axis=-1)
    target = jax.random.randint(k2, (N,), 0, C, dtype=jnp.int32)
    loss = classification_loss(pred, target)
    jax.block_until_ready(loss)
    ref = -jnp.mean(pred[jnp.arange(N), target])
    assert jnp.allclose(loss, ref, atol=1e-6), (loss, ref)

    # --- ragged N + class tiling (multi row/col blocks, masking path) --------
    N2, C2 = 13, 160
    pred2 = jax.nn.log_softmax(jax.random.normal(k3, (N2, C2), jnp.float32), axis=-1)
    target2 = jax.random.randint(k4, (N2,), 0, C2, dtype=jnp.int32)
    loss2 = classification_loss(pred2, target2, tile_n=8, tile_c=128)
    jax.block_until_ready(loss2)
    ref2 = -jnp.mean(pred2[jnp.arange(N2), target2])
    assert jnp.allclose(loss2, ref2, atol=1e-5), (loss2, ref2)

    # --- bf16 input path (native-dtype select, f32 accumulation) -------------
    pred_bf16 = pred.astype(jnp.bfloat16)
    loss3 = classification_loss(pred_bf16, target)
    jax.block_until_ready(loss3)
    ref3 = -jnp.mean(pred_bf16.astype(jnp.float32)[jnp.arange(N), target])
    assert jnp.allclose(loss3, ref3, atol=1e-2), (loss3, ref3)

    # --- gather path (forced; normally auto-selected for vocab-scale C) ------
    N4, C4 = 16, 384
    pred4 = jax.nn.log_softmax(jax.random.normal(k5, (N4, C4), jnp.float32), axis=-1)
    target4 = jax.random.randint(k6, (N4,), 0, C4, dtype=jnp.int32)
    loss4 = classification_loss(pred4, target4, use_gather=True)
    jax.block_until_ready(loss4)
    ref4 = -jnp.mean(pred4[jnp.arange(N4), target4])
    assert jnp.allclose(loss4, ref4, atol=1e-6), (loss4, ref4)

    print("KERNEL_OK")
</pallas_src>

<mosaic_0001>
module attributes {stable_mosaic.version = 11 : i64} {
  func.func @_nll_stream_kernel(%arg0: i32, %arg1: i32, %arg2: memref<8x32xf32, #tpu.memory_space<vmem>>, %arg3: memref<8x1xi32, #tpu.memory_space<vmem>>, %arg4: memref<1x8x128xf32, #tpu.memory_space<vmem>>) attributes {dimension_semantics = [#tpu.dimension_semantics<parallel>, #tpu.dimension_semantics<arbitrary>], iteration_bounds = array<i64: 1, 1>, scalar_prefetch = 0 : i64, scratch_operands = 0 : i64, tpu.core_type = #tpu.core_type<tc>, window_params = [{transform_indices = @transform_0, window_bounds = array<i64: 8, 32>}, {transform_indices = @transform_1, window_bounds = array<i64: 8, 1>}, {transform_indices = @transform_2, window_bounds = array<i64: 1, 8, 128>}]} {
    %c0 = arith.constant 0 : index
    %c0_0 = arith.constant 0 : index
    %0 = vector.load %arg2[%c0, %c0_0] : memref<8x32xf32, #tpu.memory_space<vmem>>, vector<8x32xf32>
    %c0_1 = arith.constant 0 : index
    %c0_2 = arith.constant 0 : index
    %1 = vector.load %arg3[%c0_1, %c0_2] : memref<8x1xi32, #tpu.memory_space<vmem>>, vector<8x1xi32>
    %2 = tpu.iota {dimensions = array<i32: 1>} : vector<8x32xi32>
    %c32_i32 = arith.constant 32 : i32
    %3 = arith.muli %arg1, %c32_i32 : i32
    %4 = vector.broadcast %3 : i32 to vector<8x32xi32>
    %5 = arith.addi %2, %4 : vector<8x32xi32>
    %6 = vector.broadcast %1 : vector<8x1xi32> to vector<8x32xi32>
    %7 = arith.cmpi eq, %5, %6 : vector<8x32xi32>
    %cst = arith.constant 0.000000e+00 : f32
    %8 = vector.broadcast %cst : f32 to vector<8x32xf32>
    %9 = arith.select %7, %0, %8 : vector<8x32xi1>, vector<8x32xf32>
    %cst_3 = arith.constant dense<0.000000e+00> : vector<8xf32>
    %10 = vector.multi_reduction <add>, %9, %cst_3 [1] : vector<8x32xf32> to vector<8xf32>
    %11 = vector.shape_cast %10 : vector<8xf32> to vector<8x1xf32>
    %12 = tpu.iota {dimensions = array<i32: 0>} : vector<8x1xi32>
    %c8_i32 = arith.constant 8 : i32
    %13 = arith.muli %arg0, %c8_i32 : i32
    %14 = vector.broadcast %13 : i32 to vector<8x1xi32>
    %15 = arith.addi %12, %14 : vector<8x1xi32>
    %c8_i32_4 = arith.constant 8 : i32
    %16 = vector.broadcast %c8_i32_4 : i32 to vector<8x1xi32>
    %17 = arith.cmpi slt, %15, %16 : vector<8x1xi32>
    %cst_5 = arith.constant 0.000000e+00 : f32
    %18 = vector.broadcast %cst_5 : f32 to vector<8x1xf32>
    %19 = arith.select %17, %11, %18 : vector<8x1xi1>, vector<8x1xf32>
    %20 = vector.shape_cast %19 : vector<8x1xf32> to vector<1x8x1xf32>
    %cst_6 = arith.constant dense<0.000000e+00> : vector<1xf32>
    %21 = vector.multi_reduction <add>, %20, %cst_6 [1, 2] : vector<1x8x1xf32> to vector<1xf32>
    %22 = vector.shape_cast %21 : vector<1xf32> to vector<1x1x1xf32>
    %23 = vector.extract %22[0, 0, 0] : f32 from vector<1x1x1xf32>
    %24 = tpu.iota {dimensions = array<i32: 1>} : vector<1x8x128xi32>
    %25 = tpu.iota {dimensions = array<i32: 2>} : vector<1x8x128xi32>
    %c0_i32 = arith.constant 0 : i32
    %26 = vector.broadcast %c0_i32 : i32 to vector<1x8x128xi32>
    %27 = arith.cmpi eq, %24, %26 : vector<1x8x128xi32>
    %c0_i32_7 = arith.constant 0 : i32
    %28 = vector.broadcast %c0_i32_7 : i32 to vector<1x8x128xi32>
    %29 = arith.cmpi eq, %25, %28 : vector<1x8x128xi32>
    %30 = arith.andi %27, %29 : vector<1x8x128xi1>
    %cst_8 = arith.constant 0.000000e+00 : f32
    %31 = vector.broadcast %23 : f32 to vector<1x8x128xf32>
    %32 = vector.broadcast %cst_8 : f32 to vector<1x8x128xf32>
    %33 = arith.select %30, %31, %32 : vector<1x8x128xi1>, vector<1x8x128xf32>
    %c0_i32_9 = arith.constant 0 : i32
    %34 = arith.cmpi eq, %arg1, %c0_i32_9 : i32
    %35 = arith.extui %34 : i1 to i32
    %c0_i32_10 = arith.constant 0 : i32
    %36 = arith.cmpi ne, %35, %c0_i32_10 : i32
    scf.if %36 {
      %c0_13 = arith.constant 0 : index
      %c0_14 = arith.constant 0 : index
      %c0_15 = arith.constant 0 : index
      %40 = vector.load %arg4[%c0_13, %c0_14, %c0_15] : memref<1x8x128xf32, #tpu.memory_space<vmem>>, vector<1x8x128xf32>
      tpu.vector_store %arg4[%c0_13, %c0_14, %c0_15], %33 {strides = array<i32>} : memref<1x8x128xf32, #tpu.memory_space<vmem>>, vector<1x8x128xf32>,
    } else {
    }
    %c0_i32_11 = arith.constant 0 : i32
    %37 = arith.cmpi sgt, %arg1, %c0_i32_11 : i32
    %38 = arith.extui %37 : i1 to i32
    %c0_i32_12 = arith.constant 0 : i32
    %39 = arith.cmpi ne, %38, %c0_i32_12 : i32
    scf.if %39 {
      %c0_13 = arith.constant 0 : index
      %c0_14 = arith.constant 0 : index
      %c0_15 = arith.constant 0 : index
      %40 = vector.load %arg4[%c0_13, %c0_14, %c0_15] : memref<1x8x128xf32, #tpu.memory_space<vmem>>, vector<1x8x128xf32>
      %41 = arith.addf %40, %33 : vector<1x8x128xf32>
      %c0_16 = arith.constant 0 : index
      %c0_17 = arith.constant 0 : index
      %c0_18 = arith.constant 0 : index
      %42 = vector.load %arg4[%c0_16, %c0_17, %c0_18] : memref<1x8x128xf32, #tpu.memory_space<vmem>>, vector<1x8x128xf32>
      tpu.vector_store %arg4[%c0_16, %c0_17, %c0_18], %41 {strides = array<i32>} : memref<1x8x128xf32, #tpu.memory_space<vmem>>, vector<1x8x128xf32>,
    } else {
    }
    return
  }
  func.func @transform_0(%arg0: i32, %arg1: i32) -> (i32, i32) {
    %c0_i32 = arith.constant 0 : i32
    return %arg0, %arg1 : i32, i32
  }
  func.func @transform_1(%arg0: i32, %arg1: i32) -> (i32, i32) {
    %c0_i32 = arith.constant 0 : i32
    %c0_i32_0 = arith.constant 0 : i32
    return %arg0, %c0_i32 : i32, i32
  }
  func.func @transform_2(%arg0: i32, %arg1: i32) -> (i32, i32, i32) {
    %c0_i32 = arith.constant 0 : i32
    %c0_i32_0 = arith.constant 0 : i32
    %c0_i32_1 = arith.constant 0 : i32
    return %arg0, %c0_i32, %c0_i32_0 : i32, i32, i32
  }
}

</mosaic_0001>

<bundles_post_ra>
// kernel: tpu_custom_call.1
= control target key start
LH: loop header
LB: loop body
LE: loop exit
PB: predicated region body
PF: predicated region fallthrough
CT: control target
= control target key end

     0   :  { %s136_s0 = inlined_call_operand.vmem [shape: f32[8,32], index: 0, kind: input, shape index: {}]   ;;  %s137_s1 = inlined_call_operand.vmem [shape: s32[8,1], index: 1, kind: input, shape index: {}]   ;;  %s138_s2 = inlined_call_operand.hbm [shape: f32[1,8,128], index: 2, kind: output, shape index: {}]  }
   0x1   :  { %v13_v0 = vld [vmem:[%s137_s1] sm:$0xff] }
   0x2   :  { %7 = vsyncpa [#allocation3], 0  ;;  %v110_v1 = vmov 0   ;;  %v14_v2 = vlaneseq  ;;  %v12_v4 = vld [vmem:[%s136_s0] sm:$0xff]  ;;  %vm24_vm0 = vcmask 261120   ;;  %vm35_vm2 = vcmask 7168  }
   0x3   :  { %83 = vset.pattern.permute.xlu0 %v110_v1  ;;  %s111_s0 = smov [#allocation2]   ;;  %s70_s15 = sshll.u32 %s138_s2, 4  ;;  %s71_s15 = int_to_ptr.hbm [resolvable:$true] %s70_s15 }
   0x4   :  { %20 = vperm.xlu0 %83, %v13_v0   ;;  %v15_v3 = vand.u32 127, %v14_v2  ;;  %v29_v17 = vshrl.u32 %v14_v2, 7  ;;  %s68_s1 = sshll.u32 %s111_s0, 4  ;;  %s69_s1 = int_to_ptr.vmem [resolvable:$true] %s68_s1 }
   0x6   :  { %vm46_vm3 = vcmp.eq.s32.totalorder %v29_v17, 0  ;;  %vm47_vm4 = vcmp.eq.s32.totalorder %v15_v3, 0 }
   0x7   :  { %vm48_vm5 = vmand %vm46_vm3, %vm47_vm4 }
  0x76   :  { %v21_v5 = vpop.permute.xlu0 %20 }
  0x77   :  { %vm22_vm1 = vcmp.eq.s32.totalorder %v15_v3, %v21_v5 }
  0x78   :  { %v23_v6 = vsel %vm22_vm1, %v12_v4, 0.0 }
  0x79   :  { %v25_v7 = vsel %vm24_vm0, %v23_v6, 0.0 }
  0x7a   :  { %26 = vadd.xlane.f32.xlu0 %v25_v7 }
  0xed   :  { %v27_v8 = vpop.xlane.xlu0 %26 }
  0xee   :  { %v36_v9 = vsel %vm35_vm2, %v27_v8, 0.0 }
  0xef   :  { %37 = vadd.xlane.f32.xlu1 %v36_v9 }
 0x162   :  { %v38_v10 = vpop.xlane.xlu1 %37 }
 0x163   :  { %v39_v11 = vrot.slane %v38_v10, 4 }
 0x165   :  { %v40_v12 = vadd.f32 %v39_v11, %v38_v10 }
 0x167   :  { %v41_v13 = vrot.slane %v40_v12, 2 }
 0x169   :  { %v42_v14 = vadd.f32 %v41_v13, %v40_v12 }
 0x16b   :  { %v43_v15 = vrot.slane %v42_v14, 1 }
 0x16d   :  { %v44_v16 = vadd.f32 %v43_v15, %v42_v14 }
 0x16f   :  { %79 = vpush %v44_v16 }
 0x1a0   :  { %s80_s16 = spop %79 }
 0x1a1   :  { %v49_v18 = vstv %s80_s16 }
 0x1a2   :  { %v50_v19 = vsel %vm48_vm5, %v49_v18, 0.0 }
 0x1a3   :  { %55 = vst [vmem:[#allocation2] sm:$0xff] %v50_v19 }
 0x1a4   :  { %73 = dma.vmem_to_hbm [thread:$0]  %s69_s1, 128, %s71_s15, [#allocation3]  }
 0x1a5   :  { %108 = dma.done.wait [#allocation3], 128  }
 0x1a6   :  { %109 = vsyncadd [#allocation3], 4294967168 }
 0x1a7   :  { %78 = vsyncpa [#allocation3], 1 }

</bundles_post_ra>
